<compile_context>
chip_gen: v6e
topology: v6e:2x2x1
jax: 0.10.0
libtpu: 0.0.40
codegen_flags: <defaults>
</compile_context>

<pallas_src>
import functools
import math

import jax
import jax.numpy as jnp
from jax.experimental import pallas as pl
from jax.experimental.pallas import tpu as pltpu


# ----------------------------- Pallas kernel -------------------------------

def noisy_dueling_kernel(x_ref,
                         w1_ref, b1_ref,
                         w2_ref, b2_ref,
                         wh1_ref, bh1_ref,
                         wq_ref, bq_ref,
                         q_ref):
    # x: (TB, S) f32 -> cast to bf16 in-kernel (hidden under the matmul chain).
    x = x_ref[...].astype(jnp.bfloat16)

    # fc1 -> relu  (bf16 MXU inputs, f32 accumulate, f32 epilogue)
    h1 = jnp.dot(x, w1_ref[...], preferred_element_type=jnp.float32)
    h1 = jnp.maximum(h1 + b1_ref[...], 0.0)                       # (TB, 128)

    # fc2 -> relu
    h2 = jnp.dot(h1.astype(jnp.bfloat16), w2_ref[...],
                 preferred_element_type=jnp.float32)
    h2 = jnp.maximum(h2 + b2_ref[...], 0.0)                       # (TB, 128)

    # fused value/advantage hidden layer: [vh | ah] in one 128-lane matmul
    hh = jnp.dot(h2.astype(jnp.bfloat16), wh1_ref[...],
                 preferred_element_type=jnp.float32)
    hh = jnp.maximum(hh + bh1_ref[...], 0.0)                      # (TB, 128)

    # final fused weight already contains head-2 AND the dueling combine
    # (q = V + A - mean(A)); lanes 0..A-1 hold the q-values, rest are zero.
    q = jnp.dot(hh.astype(jnp.bfloat16), wq_ref[...],
                preferred_element_type=jnp.float32)
    q_ref[...] = q + bq_ref[...]                                  # (TB, 128)


# ------------------------------ wrapper (glue) -------------------------------

def _tensorcores_per_chip():
    """Best-effort detection of 2-TC chips (v7x); falls back to 1."""
    try:
        kind = str(getattr(jax.devices()[0], "device_kind", "")).lower()
    except Exception:
        return 1
    return 2 if "v7" in kind else 1


def noisy_dueling_forward(x, params, num_actions, *, block_b=1024):
    """Full forward pass in one Pallas kernel with a 1-D batch grid."""
    B, S = x.shape
    n_tc = _tensorcores_per_chip()

    # Batch tile: one big tile on single-TC chips, split over both TCs on v7x.
    # Tiles are multiples of 16 rows (bf16 sublane packing friendly).
    per_core = max(16, -(-B // max(n_tc, 1)))          # ceil(B / n_tc), >= 16
    bb = min(block_b, per_core)
    bb = ((bb + 15) // 16) * 16
    b_pad = ((B + bb - 1) // bb) * bb
    x_in = x if b_pad == B else jnp.pad(x, ((0, b_pad - B), (0, 0)))

    grid = (b_pad // bb,)
    const = lambda i: (0, 0)          # weights/biases: VMEM-resident block

    w_args = (params["w1_bf"], params["b1_f32"],
              params["w2_bf"], params["b2_f32"],
              params["wh1_bf"], params["bh1_f32"],
              params["wq_bf"], params["bq_f32"])

    flops = 2 * b_pad * (S * 128 + 3 * 128 * 128)
    bytes_accessed = (x_in.size * 4 + b_pad * 128 * 4
                      + sum(int(a.size) * a.dtype.itemsize for a in w_args))

    out = pl.pallas_call(
        noisy_dueling_kernel,
        out_shape=jax.ShapeDtypeStruct((b_pad, 128), jnp.float32),
        grid=grid,
        in_specs=[
            pl.BlockSpec((bb, S), lambda i: (i, 0)),      # x (batch-tiled, f32)
            pl.BlockSpec((S, 128), const),                # w1 (bf16)
            pl.BlockSpec((1, 128), const),                # b1 (f32)
            pl.BlockSpec((128, 128), const),              # w2
            pl.BlockSpec((1, 128), const),                # b2
            pl.BlockSpec((128, 128), const),              # fused head-1 W
            pl.BlockSpec((1, 128), const),                # fused head-1 b
            pl.BlockSpec((128, 128), const),              # fused head-2+dueling W
            pl.BlockSpec((1, 128), const),                # fused head-2+dueling b
        ],
        out_specs=pl.BlockSpec((bb, 128), lambda i: (i, 0)),
        compiler_params=pltpu.CompilerParams(
            dimension_semantics=("parallel",)),
        cost_estimate=pl.CostEstimate(flops=flops, transcendentals=0,
                                      bytes_accessed=bytes_accessed),
    )(x_in, *w_args)

    # q-values live in lanes 0..A-1 of the lane-dense block.
    return out[:B, :num_actions]


# --------------------------- parameter setup (glue) -------------------------

def _linear_init(key, fan_in, fan_out):
    """Mimic nn.Linear default init: U(-1/sqrt(fan_in), 1/sqrt(fan_in))."""
    kw, kb = jax.random.split(key)
    bound = 1.0 / math.sqrt(fan_in)
    w = jax.random.uniform(kw, (fan_in, fan_out), jnp.float32, -bound, bound)
    b = jax.random.uniform(kb, (1, fan_out), jnp.float32, -bound, bound)
    return w, b


def _noisy_linear_effective(key, fan_in, fan_out, sigma_init=0.5):
    """Factorized NoisyLinear effective weights: W_mu + W_sigma*(f(e_out)⊗f(e_in))."""
    k_wmu, k_bmu, k_in, k_out = jax.random.split(key, 4)
    mu_range = 1.0 / math.sqrt(fan_in)
    w_mu = jax.random.uniform(k_wmu, (fan_out, fan_in), jnp.float32,
                              -mu_range, mu_range)
    b_mu = jax.random.uniform(k_bmu, (fan_out,), jnp.float32,
                              -mu_range, mu_range)
    w_sigma = jnp.full((fan_out, fan_in), sigma_init / math.sqrt(fan_in),
                       jnp.float32)
    b_sigma = jnp.full((fan_out,), sigma_init / math.sqrt(fan_in), jnp.float32)

    def f(v):
        return jnp.sign(v) * jnp.sqrt(jnp.abs(v))

    eps_in = f(jax.random.normal(k_in, (fan_in,), jnp.float32))
    eps_out = f(jax.random.normal(k_out, (fan_out,), jnp.float32))
    w_eps = jnp.outer(eps_out, eps_in)          # (out, in)
    b_eps = eps_out                             # (out,)

    w_eff = (w_mu + w_sigma * w_eps).T          # -> (in, out)
    b_eff = (b_mu + b_sigma * b_eps)[None, :]   # -> (1, out)
    return w_eff, b_eff


def make_params(key, num_states, num_actions, initial_sigma=0.5):
    assert num_actions <= 127
    keys = jax.random.split(key, 6)
    w1, b1 = _linear_init(keys[0], num_states, 128)
    w2, b2 = _linear_init(keys[1], 128, 128)
    vw1, vb1 = _noisy_linear_effective(keys[2], 128, 64, initial_sigma)
    vw2, vb2 = _noisy_linear_effective(keys[3], 64, 1, initial_sigma)
    aw1, ab1 = _noisy_linear_effective(keys[4], 128, 64, initial_sigma)
    aw2, ab2 = _noisy_linear_effective(keys[5], 64, num_actions, initial_sigma)

    # Fused head-1: [vw1 | aw1] -> (128, 128), [vb1 | ab1] -> (1, 128)
    wh1 = jnp.concatenate([vw1, aw1], axis=1)
    bh1 = jnp.concatenate([vb1, ab1], axis=1)

    # Fused head-2: block-diagonal (f32).
    #   rows 0..63   (value hidden) -> col 0        (value)
    #   rows 64..127 (adv hidden)   -> cols 1..A    (advantage)
    wh2 = jnp.zeros((128, 128), jnp.float32)
    wh2 = wh2.at[:64, 0:1].set(vw2)
    wh2 = wh2.at[64:, 1:1 + num_actions].set(aw2)
    bh2 = jnp.zeros((1, 128), jnp.float32)
    bh2 = bh2.at[:, 0:1].set(vb2)
    bh2 = bh2.at[:, 1:1 + num_actions].set(ab2)

    # Dueling combine folded in (f32 fold, bf16 cast afterwards):
    #   q_j = V + A_j - mean(A)  for j = 0..A-1  (q in output lanes 0..A-1)
    A = num_actions
    M = jnp.zeros((128, 128), jnp.float32)
    M = M.at[0, :A].set(1.0)                                      # V broadcast
    M = M.at[1:1 + A, :A].set(jnp.eye(A, dtype=jnp.float32) - 1.0 / A)
    wq = wh2 @ M                                                  # (128, 128)
    bq = bh2 @ M                                                  # (1, 128)

    return dict(
        # raw (unfused, f32) params for the pure-JAX reference
        w1=w1, b1=b1, w2=w2, b2=b2,
        vw1=vw1, vb1=vb1, vw2=vw2, vb2=vb2,
        aw1=aw1, ab1=ab1, aw2=aw2, ab2=ab2,
        # fused / bf16 params consumed by the kernel
        w1_bf=w1.astype(jnp.bfloat16), b1_f32=b1,
        w2_bf=w2.astype(jnp.bfloat16), b2_f32=b2,
        wh1_bf=wh1.astype(jnp.bfloat16), bh1_f32=bh1,
        wq_bf=wq.astype(jnp.bfloat16), bq_f32=bq,
    )


# ------------------------------ reference (JAX) ------------------------------

def reference_forward(x, p):
    h1 = jnp.maximum(x @ p["w1"] + p["b1"], 0.0)
    h2 = jnp.maximum(h1 @ p["w2"] + p["b2"], 0.0)
    v = jnp.maximum(h2 @ p["vw1"] + p["vb1"], 0.0) @ p["vw2"] + p["vb2"]
    a = jnp.maximum(h2 @ p["aw1"] + p["ab1"], 0.0) @ p["aw2"] + p["ab2"]
    return v + a - a.mean(axis=1, keepdims=True)


# ----------------------------------- main ------------------------------------

if __name__ == "__main__":
    # LunarLander-v3: NUM_STATES = 8, NUM_ACTIONS = 4.
    NUM_STATES, NUM_ACTIONS = 8, 4
    BATCH = 2

    key = jax.random.PRNGKey(0)
    k_params, k_x = jax.random.split(key)
    params = make_params(k_params, NUM_STATES, NUM_ACTIONS, initial_sigma=0.5)
    x = jax.random.normal(k_x, (BATCH, NUM_STATES), jnp.float32)

    q = noisy_dueling_forward(x, params, NUM_ACTIONS)
    q = jax.block_until_ready(q)

    q_ref = reference_forward(x, params)
    assert q.shape == (BATCH, NUM_ACTIONS)
    # bf16 matmul inputs (f32 accumulation) vs. f32 reference: loose tolerance.
    assert jnp.allclose(q, q_ref, atol=2e-2, rtol=2e-2), (q, q_ref)

    print("KERNEL_OK")
</pallas_src>

<mosaic_0001>
module attributes {stable_mosaic.version = 11 : i64} {
  func.func @noisy_dueling_kernel(%arg0: i32, %arg1: memref<16x8xf32, #tpu.memory_space<vmem>>, %arg2: memref<8x128xbf16, #tpu.memory_space<vmem>>, %arg3: memref<1x128xf32, #tpu.memory_space<vmem>>, %arg4: memref<128x128xbf16, #tpu.memory_space<vmem>>, %arg5: memref<1x128xf32, #tpu.memory_space<vmem>>, %arg6: memref<128x128xbf16, #tpu.memory_space<vmem>>, %arg7: memref<1x128xf32, #tpu.memory_space<vmem>>, %arg8: memref<128x128xbf16, #tpu.memory_space<vmem>>, %arg9: memref<1x128xf32, #tpu.memory_space<vmem>>, %arg10: memref<16x128xf32, #tpu.memory_space<vmem>>) attributes {dimension_semantics = [#tpu.dimension_semantics<parallel>], iteration_bounds = array<i64: 1>, scalar_prefetch = 0 : i64, scratch_operands = 0 : i64, tpu.core_type = #tpu.core_type<tc>, window_params = [{transform_indices = @transform_0, window_bounds = array<i64: 16, 8>}, {pipeline_mode = #tpu.pipeline_mode<synchronous>, transform_indices = @transform_1, window_bounds = array<i64: 8, 128>}, {pipeline_mode = #tpu.pipeline_mode<synchronous>, transform_indices = @transform_2, window_bounds = array<i64: 1, 128>}, {pipeline_mode = #tpu.pipeline_mode<synchronous>, transform_indices = @transform_3, window_bounds = array<i64: 128, 128>}, {pipeline_mode = #tpu.pipeline_mode<synchronous>, transform_indices = @transform_4, window_bounds = array<i64: 1, 128>}, {pipeline_mode = #tpu.pipeline_mode<synchronous>, transform_indices = @transform_5, window_bounds = array<i64: 128, 128>}, {pipeline_mode = #tpu.pipeline_mode<synchronous>, transform_indices = @transform_6, window_bounds = array<i64: 1, 128>}, {pipeline_mode = #tpu.pipeline_mode<synchronous>, transform_indices = @transform_7, window_bounds = array<i64: 128, 128>}, {pipeline_mode = #tpu.pipeline_mode<synchronous>, transform_indices = @transform_8, window_bounds = array<i64: 1, 128>}, {transform_indices = @transform_9, window_bounds = array<i64: 16, 128>}]} {
    %c0 = arith.constant 0 : index
    %c0_0 = arith.constant 0 : index
    %0 = vector.load %arg1[%c0, %c0_0] : memref<16x8xf32, #tpu.memory_space<vmem>>, vector<16x8xf32>
    %1 = arith.truncf %0 : vector<16x8xf32> to vector<16x8xbf16>
    %c0_1 = arith.constant 0 : index
    %c0_2 = arith.constant 0 : index
    %2 = vector.load %arg2[%c0_1, %c0_2] : memref<8x128xbf16, #tpu.memory_space<vmem>>, vector<8x128xbf16>
    %cst = arith.constant dense<0.000000e+00> : vector<16x128xf32>
    %3 = tpu.matmul %1, %2, %cst {dimension_numbers = #tpu.dot_dimension_numbers<[1], [0], [0], [1], [0, 0, 1, 1], [], []>} : vector<16x8xbf16>, vector<8x128xbf16>, vector<16x128xf32> -> vector<16x128xf32>
    %c0_3 = arith.constant 0 : index
    %c0_4 = arith.constant 0 : index
    %4 = vector.load %arg3[%c0_3, %c0_4] : memref<1x128xf32, #tpu.memory_space<vmem>>, vector<1x128xf32>
    %5 = vector.broadcast %4 : vector<1x128xf32> to vector<16x128xf32>
    %6 = arith.addf %3, %5 : vector<16x128xf32>
    %cst_5 = arith.constant 0.000000e+00 : f32
    %7 = vector.broadcast %cst_5 : f32 to vector<16x128xf32>
    %8 = arith.maximumf %6, %7 : vector<16x128xf32>
    %9 = arith.truncf %8 : vector<16x128xf32> to vector<16x128xbf16>
    %c0_6 = arith.constant 0 : index
    %c0_7 = arith.constant 0 : index
    %10 = vector.load %arg4[%c0_6, %c0_7] : memref<128x128xbf16, #tpu.memory_space<vmem>>, vector<128x128xbf16>
    %cst_8 = arith.constant dense<0.000000e+00> : vector<16x128xf32>
    %11 = tpu.matmul %9, %10, %cst_8 {dimension_numbers = #tpu.dot_dimension_numbers<[1], [0], [0], [1], [0, 0, 1, 1], [], []>} : vector<16x128xbf16>, vector<128x128xbf16>, vector<16x128xf32> -> vector<16x128xf32>
    %c0_9 = arith.constant 0 : index
    %c0_10 = arith.constant 0 : index
    %12 = vector.load %arg5[%c0_9, %c0_10] : memref<1x128xf32, #tpu.memory_space<vmem>>, vector<1x128xf32>
    %13 = vector.broadcast %12 : vector<1x128xf32> to vector<16x128xf32>
    %14 = arith.addf %11, %13 : vector<16x128xf32>
    %cst_11 = arith.constant 0.000000e+00 : f32
    %15 = vector.broadcast %cst_11 : f32 to vector<16x128xf32>
    %16 = arith.maximumf %14, %15 : vector<16x128xf32>
    %17 = arith.truncf %16 : vector<16x128xf32> to vector<16x128xbf16>
    %c0_12 = arith.constant 0 : index
    %c0_13 = arith.constant 0 : index
    %18 = vector.load %arg6[%c0_12, %c0_13] : memref<128x128xbf16, #tpu.memory_space<vmem>>, vector<128x128xbf16>
    %cst_14 = arith.constant dense<0.000000e+00> : vector<16x128xf32>
    %19 = tpu.matmul %17, %18, %cst_14 {dimension_numbers = #tpu.dot_dimension_numbers<[1], [0], [0], [1], [0, 0, 1, 1], [], []>} : vector<16x128xbf16>, vector<128x128xbf16>, vector<16x128xf32> -> vector<16x128xf32>
    %c0_15 = arith.constant 0 : index
    %c0_16 = arith.constant 0 : index
    %20 = vector.load %arg7[%c0_15, %c0_16] : memref<1x128xf32, #tpu.memory_space<vmem>>, vector<1x128xf32>
    %21 = vector.broadcast %20 : vector<1x128xf32> to vector<16x128xf32>
    %22 = arith.addf %19, %21 : vector<16x128xf32>
    %cst_17 = arith.constant 0.000000e+00 : f32
    %23 = vector.broadcast %cst_17 : f32 to vector<16x128xf32>
    %24 = arith.maximumf %22, %23 : vector<16x128xf32>
    %25 = arith.truncf %24 : vector<16x128xf32> to vector<16x128xbf16>
    %c0_18 = arith.constant 0 : index
    %c0_19 = arith.constant 0 : index
    %26 = vector.load %arg8[%c0_18, %c0_19] : memref<128x128xbf16, #tpu.memory_space<vmem>>, vector<128x128xbf16>
    %cst_20 = arith.constant dense<0.000000e+00> : vector<16x128xf32>
    %27 = tpu.matmul %25, %26, %cst_20 {dimension_numbers = #tpu.dot_dimension_numbers<[1], [0], [0], [1], [0, 0, 1, 1], [], []>} : vector<16x128xbf16>, vector<128x128xbf16>, vector<16x128xf32> -> vector<16x128xf32>
    %c0_21 = arith.constant 0 : index
    %c0_22 = arith.constant 0 : index
    %28 = vector.load %arg9[%c0_21, %c0_22] : memref<1x128xf32, #tpu.memory_space<vmem>>, vector<1x128xf32>
    %29 = vector.broadcast %28 : vector<1x128xf32> to vector<16x128xf32>
    %30 = arith.addf %27, %29 : vector<16x128xf32>
    %c0_23 = arith.constant 0 : index
    %c0_24 = arith.constant 0 : index
    %31 = vector.load %arg10[%c0_23, %c0_24] : memref<16x128xf32, #tpu.memory_space<vmem>>, vector<16x128xf32>
    tpu.vector_store %arg10[%c0_23, %c0_24], %30 {strides = array<i32>} : memref<16x128xf32, #tpu.memory_space<vmem>>, vector<16x128xf32>,
    return
  }
  func.func @transform_0(%arg0: i32) -> (i32, i32) {
    %c0_i32 = arith.constant 0 : i32
    %c0_i32_0 = arith.constant 0 : i32
    return %arg0, %c0_i32 : i32, i32
  }
  func.func @transform_1(%arg0: i32) -> (i32, i32) {
    %c0_i32 = arith.constant 0 : i32
    %c0_i32_0 = arith.constant 0 : i32
    %c0_i32_1 = arith.constant 0 : i32
    return %c0_i32, %c0_i32_0 : i32, i32
  }
  func.func @transform_2(%arg0: i32) -> (i32, i32) {
    %c0_i32 = arith.constant 0 : i32
    %c0_i32_0 = arith.constant 0 : i32
    %c0_i32_1 = arith.constant 0 : i32
    return %c0_i32, %c0_i32_0 : i32, i32
  }
  func.func @transform_3(%arg0: i32) -> (i32, i32) {
    %c0_i32 = arith.constant 0 : i32
    %c0_i32_0 = arith.constant 0 : i32
    %c0_i32_1 = arith.constant 0 : i32
    return %c0_i32, %c0_i32_0 : i32, i32
  }
  func.func @transform_4(%arg0: i32) -> (i32, i32) {
    %c0_i32 = arith.constant 0 : i32
    %c0_i32_0 = arith.constant 0 : i32
    %c0_i32_1 = arith.constant 0 : i32
    return %c0_i32, %c0_i32_0 : i32, i32
  }
  func.func @transform_5(%arg0: i32) -> (i32, i32) {
    %c0_i32 = arith.constant 0 : i32
    %c0_i32_0 = arith.constant 0 : i32
    %c0_i32_1 = arith.constant 0 : i32
    return %c0_i32, %c0_i32_0 : i32, i32
  }
  func.func @transform_6(%arg0: i32) -> (i32, i32) {
    %c0_i32 = arith.constant 0 : i32
    %c0_i32_0 = arith.constant 0 : i32
    %c0_i32_1 = arith.constant 0 : i32
    return %c0_i32, %c0_i32_0 : i32, i32
  }
  func.func @transform_7(%arg0: i32) -> (i32, i32) {
    %c0_i32 = arith.constant 0 : i32
    %c0_i32_0 = arith.constant 0 : i32
    %c0_i32_1 = arith.constant 0 : i32
    return %c0_i32, %c0_i32_0 : i32, i32
  }
  func.func @transform_8(%arg0: i32) -> (i32, i32) {
    %c0_i32 = arith.constant 0 : i32
    %c0_i32_0 = arith.constant 0 : i32
    %c0_i32_1 = arith.constant 0 : i32
    return %c0_i32, %c0_i32_0 : i32, i32
  }
  func.func @transform_9(%arg0: i32) -> (i32, i32) {
    %c0_i32 = arith.constant 0 : i32
    %c0_i32_0 = arith.constant 0 : i32
    return %arg0, %c0_i32 : i32, i32
  }
}

</mosaic_0001>

<bundles_post_ra>
// kernel: tpu_custom_call.1
= control target key start
LH: loop header
LB: loop body
LE: loop exit
PB: predicated region body
PF: predicated region fallthrough
CT: control target
= control target key end

     0   :  { %14 = vsyncpa [#allocation3], 0  ;;  %s870_s0 = inlined_call_operand.vmem [shape: f32[16,8], index: 0, kind: input, shape index: {}]   ;;  %s871_s1 = inlined_call_operand.vmem [shape: bf16[8,128], index: 1, kind: input, shape index: {}]   ;;  %s872_s2 = inlined_call_operand.vmem [shape: f32[1,128], index: 2, kind: input, shape index: {}]   ;;  %s873_s3 = inlined_call_operand.hbm [shape: bf16[128,128], index: 3, kind: input, shape index: {}]   ;;  %s874_s4 = inlined_call_operand.vmem [shape: f32[1,128], index: 4, kind: input, shape index: {}]   ;;  %s875_s5 = inlined_call_operand.hbm [shape: bf16[128,128], index: 5, kind: input, shape index: {}]   ;;  %s876_s6 = inlined_call_operand.vmem [shape: f32[1,128], index: 6, kind: input, shape index: {}]   ;;  %s877_s7 = inlined_call_operand.hbm [shape: bf16[128,128], index: 7, kind: input, shape index: {}]   ;;  %s878_s8 = inlined_call_operand.vmem [shape: f32[1,128], index: 8, kind: input, shape index: {}]   ;;  %s879_s9 = inlined_call_operand.hbm [shape: f32[16,128], index: 9, kind: output, shape index: {}]  }
   0x1   :  { %15 = vsyncpa [#allocation6], 0 }
   0x2   :  { %16 = vsyncpa [#allocation4], 0  ;;  %s744_s30 = smov [#allocation5]   ;;  %s745_s11 = smov [#allocation2]  }
   0x3   :  { %s42_s10 = sshll.u32 %s744_s30, 4  ;;  %s28_s12 = sshll.u32 %s745_s11, 4  ;;  %s43_s10 = int_to_ptr.vmem [resolvable:$true] %s42_s10  ;;  %s29_s12 = int_to_ptr.vmem [resolvable:$true] %s28_s12 }
   0x4   :  { %s666_s13 = scalar_lea.vmem %s43_s10, 1024  ;;  %p671_p1 = scmp.lt.s32.totalorder %s43_s10, %s43_s10 }
   0x5   :  { %p667_p0 = scmp.ne.s32.totalorder %s43_s10, %s666_s13  ;;  %p672_p2 = scmp.lt.s32.totalorder %s666_s13, %s666_s13 }
   0x7   :  { %p673_p3 = por %p672_p2, %p671_p1 }
   0x9   :  { %p674_p4 = pnand %p673_p3, %p667_p0 }
   0xb   :  { %677 = shalt.err (!%p674_p4)
}
   0xc   :  { %s746_s14 = smov 64   ;;  %s747_s15 = smov 4  }
   0xd   :  { %48 = dma.hbm_to_vmem [thread:$0]  %s875_s5, 1024, %s43_s10, [#allocation6], %s746_s14, %s746_s14, %s747_s15  }
   0xe   :  { %s686_s18 = scalar_lea.vmem %s29_s12, 1024  ;;  %p691_p6 = scmp.lt.s32.totalorder %s29_s12, %s29_s12 }
   0xf   :  { %p687_p5 = scmp.ne.s32.totalorder %s29_s12, %s686_s18  ;;  %p692_p7 = scmp.lt.s32.totalorder %s686_s18, %s686_s18 }
  0x11   :  { %p693_p8 = por %p692_p7, %p691_p6 }
  0x13   :  { %p694_p9 = pnand %p693_p8, %p687_p5 }
  0x15   :  { %697 = shalt.err (!%p694_p9)
}
  0x16   :  { %34 = dma.hbm_to_vmem [thread:$0]  %s873_s3, 1024, %s29_s12, [#allocation3], %s746_s14, %s746_s14, %s747_s15  }
  0x17   :  { %s748_s21 = smov [#allocation7]  }
  0x18   :  { %s56_s22 = sshll.u32 %s748_s21, 4  ;;  %s57_s22 = int_to_ptr.vmem [resolvable:$true] %s56_s22 }
  0x19   :  { %s706_s23 = scalar_lea.vmem %s57_s22, 1024  ;;  %p711_p11 = scmp.lt.s32.totalorder %s57_s22, %s57_s22 }
  0x1a   :  { %p707_p10 = scmp.ne.s32.totalorder %s57_s22, %s706_s23  ;;  %p712_p12 = scmp.lt.s32.totalorder %s706_s23, %s706_s23 }
  0x1c   :  { %p713_p13 = por %p712_p12, %p711_p11 }
  0x1e   :  { %p714_p0 = pnand %p713_p13, %p707_p10 }
  0x20   :  { %717 = shalt.err (!%p714_p0)
}
  0x21   :  { %62 = dma.hbm_to_vmem [thread:$0]  %s877_s7, 1024, %s57_s22, [#allocation6], %s746_s14, %s746_s14, %s747_s15  }
  0x22   :  { %738 = dma.done.wait [#allocation3], 1024  }
  0x23   :  { %739 = vsyncadd [#allocation3], 4294966272 }
  0x24   :  { %740 = dma.done.wait [#allocation6], 2048  }
  0x25   :  { %741 = vsyncadd [#allocation6], 4294965248  ;;  %v749_v0 = vmov 0.0   ;;  %vm750_vm0 = vmmov 0   ;;  %vm90_vm1 = vcmask 1043456   ;;  %v75_v2 = vld [vmem:[%s870_s0] sm:$0xff] }
  0x26   :  { %558 = vmatprep.subr.bf16.mxu0 %v749_v0  ;;  %560 = vmatprep.mubr.msk.bf16.mxu0 %vm750_vm0, %v749_v0  ;;  %v78_v1 = vld [vmem:[%s871_s1] sm:$0xf]  ;;  %v76_v3 = vld [vmem:[%s870_s0 + $0x8] sm:$0xff]  ;;  %v634_v6 = vld [vmem:[#allocation2 + $0x38] sm:$0xff]   ;;  %vm86_vm2 = vcmask 64512   ;;  %s751_s12 = smov [#allocation8]  }
  0x27   :  { %564 = vmatprep.subr.bf16.mxu1 %v749_v0  ;;  %580 = vmatprep.mubr.msk.bf16.mxu1 %vm750_vm0, %v749_v0  ;;  %v92_v4 = vsel %vm90_vm1, %v78_v1, 0  ;;  %v77_v5 = vpack.c.bf16 %v76_v3, %v75_v2  ;;  %v635_v7 = vld [vmem:[#allocation2 + $0x30] sm:$0xff]   ;;  %v636_v8 = vld [vmem:[#allocation2 + $0x28] sm:$0xff]   ;;  %v637_v9 = vld [vmem:[#allocation2 + $0x20] sm:$0xff]   ;;  %s487_s13 = sshll.u32 %s751_s12, 4  ;;  %s488_s13 = int_to_ptr.vmem [resolvable:$true] %s487_s13 }
  0x28   :  { %559 = vmatpush3.bf16.msra.mxu0 %v92_v4  ;;  %565 = vmatpush3.bf16.msra.mxu1 %v634_v6  ;;  %v638_v10 = vld [vmem:[#allocation2 + $0x18] sm:$0xff]   ;;  %v639_v11 = vld [vmem:[#allocation2 + $0x10] sm:$0xff]   ;;  %v640_v12 = vld [vmem:[#allocation2 + $0x8] sm:$0xff]   ;;  %p723_p2 = scmp.lt.s32.totalorder %s488_s13, %s488_s13 }
  0x29   :  { %584 = vmatprep.subr.bf16.mxu0 %v749_v0  ;;  %566 = vmatprep.subr.bf16.mxu1 %v749_v0  ;;  %v641_v13 = vld [vmem:[#allocation2] sm:$0xff]   ;;  %v642_v14 = vld [vmem:[#allocation5 + $0x38] sm:$0xff]   ;;  %v643_v15 = vld [vmem:[#allocation5 + $0x30] sm:$0xff]  }
  0x2a   :  { %v644_v16 = vld [vmem:[#allocation5 + $0x28] sm:$0xff]   ;;  %v645_v17 = vld [vmem:[#allocation5 + $0x20] sm:$0xff]   ;;  %v646_v18 = vld [vmem:[#allocation5 + $0x18] sm:$0xff]  }
  0x2b   :  { %561 = vmatmul.mubr.msk.bf16.vlgmr.msra.gmra.mxu0 %vm86_vm2, %v77_v5  ;;  %v500_v19 = vld [vmem:[%s872_s2] ss:$0 sm:$0xff]  ;;  %v647_v29 = vld [vmem:[#allocation5 + $0x10] sm:$0xff]   ;;  %v648_v30 = vld [vmem:[#allocation5 + $0x8] sm:$0xff]  }
  0x2c   :  { %600 = vmatprep.mubr.msk.bf16.mxu0 %vm750_vm0, %v749_v0  ;;  %567 = vmatpush3.bf16.msra.mxu1 %v635_v7  ;;  %v649_v31 = vld [vmem:[#allocation5] sm:$0xff]   ;;  %v650_v32 = vld [vmem:[#allocation7 + $0x38] sm:$0xff]   ;;  %v651_v33 = vld [vmem:[#allocation7 + $0x30] sm:$0xff]  }
  0x2d   :  { %568 = vmatprep.subr.bf16.mxu1 %v749_v0  ;;  %585 = vmatpush3.bf16.msra.mxu0 %v642_v14  ;;  %v652_v34 = vld [vmem:[#allocation7 + $0x28] sm:$0xff]   ;;  %v653_v35 = vld [vmem:[#allocation7 + $0x20] sm:$0xff]   ;;  %v654_v36 = vld [vmem:[#allocation7 + $0x18] sm:$0xff]  }
  0x2e   :  { %586 = vmatprep.subr.bf16.mxu0 %v749_v0  ;;  %v502_v37 = vld [vmem:[%s874_s4] ss:$0 sm:$0xff]  ;;  %v655_v47 = vld [vmem:[#allocation7 + $0x10] sm:$0xff]   ;;  %v656_v48 = vld [vmem:[#allocation7 + $0x8] sm:$0xff]  }
  0x2f   :  { %v657_v49 = vld [vmem:[#allocation7] sm:$0xff]  }
  0x30   :  { %569 = vmatpush3.bf16.msra.mxu1 %v636_v8  ;;  %v511_v50 = vld [vmem:[%s876_s6] ss:$0 sm:$0xff]  ;;  %s718_s6 = scalar_lea.vmem %s488_s13, 256 }
  0x31   :  { %570 = vmatprep.subr.bf16.mxu1 %v749_v0  ;;  %587 = vmatpush3.bf16.msra.mxu0 %v643_v15  ;;  %v520_v60 = vld [vmem:[%s878_s8] ss:$0 sm:$0xff]  ;;  %p719_p1 = scmp.ne.s32.totalorder %s488_s13, %s718_s6  ;;  %p724_p3 = scmp.lt.s32.totalorder %s718_s6, %s718_s6 }
  0x32   :  { %588 = vmatprep.subr.bf16.mxu0 %v749_v0 }
  0x33   :  { %p725_p4 = por %p724_p3, %p723_p2 }
  0x34   :  { %571 = vmatpush3.bf16.msra.mxu1 %v637_v9 }
  0x35   :  { %572 = vmatprep.subr.bf16.mxu1 %v749_v0  ;;  %589 = vmatpush3.bf16.msra.mxu0 %v644_v16  ;;  %p726_p5 = pnand %p725_p4, %p719_p1 }
  0x36   :  { %590 = vmatprep.subr.bf16.mxu0 %v749_v0 }
  0x38   :  { %573 = vmatpush3.bf16.msra.mxu1 %v638_v10 }
  0x39   :  { %574 = vmatprep.subr.bf16.mxu1 %v749_v0  ;;  %591 = vmatpush3.bf16.msra.mxu0 %v645_v17 }
  0x3a   :  { %592 = vmatprep.subr.bf16.mxu0 %v749_v0 }
  0x3c   :  { %575 = vmatpush3.bf16.msra.mxu1 %v639_v11 }
  0x3d   :  { %576 = vmatprep.subr.bf16.mxu1 %v749_v0  ;;  %593 = vmatpush3.bf16.msra.mxu0 %v646_v18 }
  0x3e   :  { %594 = vmatprep.subr.bf16.mxu0 %v749_v0 }
  0x40   :  { %577 = vmatpush3.bf16.msra.mxu1 %v640_v12 }
  0x41   :  { %578 = vmatprep.subr.bf16.mxu1 %v749_v0  ;;  %595 = vmatpush3.bf16.msra.mxu0 %v647_v29 }
  0x42   :  { %596 = vmatprep.subr.bf16.mxu0 %v749_v0 }
  0x44   :  { %579 = vmatpush3.bf16.msra.mxu1 %v641_v13 }
  0x45   :  { %604 = vmatprep.subr.bf16.mxu1 %v749_v0  ;;  %597 = vmatpush3.bf16.msra.mxu0 %v648_v30 }
  0x46   :  { %598 = vmatprep.subr.bf16.mxu0 %v749_v0 }
  0x49   :  { %599 = vmatpush3.bf16.msra.mxu0 %v649_v31 }
  0xeb   :  { %v128_v20 = vpop.f32.mrf.mxu0 }
  0xec   :  { %v129_v22 = vadd.f32 %v500_v19, %v128_v20 }
  0xed   :  { %v562_v21 = vpop.f32.mrf.mxu0 }
  0xee   :  { %v135_v26 = vmax.f32 %v129_v22, 0.0 }
  0xef   :  { %v131_v23 = vpop.f32.mrf.mxu0 }
  0xf0   :  { %v132_v24 = vadd.f32 %v500_v19, %v131_v23 }
  0xf1   :  { %v563_v25 = vpop.f32.mrf.mxu0 }
  0xf2   :  { %v136_v27 = vmax.f32 %v132_v24, 0.0 }
  0xf4   :  { %v137_v28 = vpack.c.bf16 %v136_v27, %v135_v26 }
  0xf6   :  { %581 = vmatmul.mubr.bf16.vlgmr.msra.gmra.mxu1 %v137_v28 }
  0xf7   :  { %620 = vmatprep.mubr.msk.bf16.mxu1 %vm750_vm0, %v749_v0  ;;  %605 = vmatpush3.bf16.msra.mxu1 %v650_v32 }
  0xf8   :  { %606 = vmatprep.subr.bf16.mxu1 %v749_v0 }
  0xfb   :  { %607 = vmatpush3.bf16.msra.mxu1 %v651_v33 }
  0xfc   :  { %608 = vmatprep.subr.bf16.mxu1 %v749_v0 }
  0xff   :  { %609 = vmatpush3.bf16.msra.mxu1 %v652_v34 }
 0x100   :  { %610 = vmatprep.subr.bf16.mxu1 %v749_v0 }
 0x103   :  { %611 = vmatpush3.bf16.msra.mxu1 %v653_v35 }
 0x104   :  { %612 = vmatprep.subr.bf16.mxu1 %v749_v0 }
 0x107   :  { %613 = vmatpush3.bf16.msra.mxu1 %v654_v36 }
 0x108   :  { %614 = vmatprep.subr.bf16.mxu1 %v749_v0 }
 0x10b   :  { %615 = vmatpush3.bf16.msra.mxu1 %v655_v47 }
 0x10c   :  { %616 = vmatprep.subr.bf16.mxu1 %v749_v0 }
 0x10f   :  { %617 = vmatpush3.bf16.msra.mxu1 %v656_v48 }
 0x110   :  { %618 = vmatprep.subr.bf16.mxu1 %v749_v0 }
 0x113   :  { %619 = vmatpush3.bf16.msra.mxu1 %v657_v49 }
 0x1b6   :  { %v243_v38 = vpop.f32.mrf.mxu1 }
 0x1b7   :  { %v244_v40 = vadd.f32 %v502_v37, %v243_v38 }
 0x1b8   :  { %v582_v39 = vpop.f32.mrf.mxu1 }
 0x1b9   :  { %v250_v44 = vmax.f32 %v244_v40, 0.0 }
 0x1ba   :  { %v246_v41 = vpop.f32.mrf.mxu1 }
 0x1bb   :  { %v247_v42 = vadd.f32 %v502_v37, %v246_v41 }
 0x1bc   :  { %v583_v43 = vpop.f32.mrf.mxu1 }
 0x1bd   :  { %v251_v45 = vmax.f32 %v247_v42, 0.0 }
 0x1bf   :  { %v252_v46 = vpack.c.bf16 %v251_v45, %v250_v44 }
 0x1c1   :  { %601 = vmatmul.mubr.bf16.vlgmr.msra.gmra.mxu0 %v252_v46 }
 0x281   :  { %v358_v51 = vpop.f32.mrf.mxu0 }
 0x282   :  { %v359_v53 = vadd.f32 %v511_v50, %v358_v51 }
 0x283   :  { %v602_v52 = vpop.f32.mrf.mxu0 }
 0x284   :  { %v365_v57 = vmax.f32 %v359_v53, 0.0 }
 0x285   :  { %v361_v54 = vpop.f32.mrf.mxu0 }
 0x286   :  { %v362_v55 = vadd.f32 %v511_v50, %v361_v54 }
 0x287   :  { %v603_v56 = vpop.f32.mrf.mxu0 }
 0x288   :  { %v366_v58 = vmax.f32 %v362_v55, 0.0 }
 0x28a   :  { %v367_v59 = vpack.c.bf16 %v366_v58, %v365_v57 }
 0x28c   :  { %621 = vmatmul.mubr.bf16.vlgmr.msra.gmra.mxu1 %v367_v59 }
 0x34c   :  { %v473_v61 = vpop.f32.mrf.mxu1 }
 0x34d   :  { %v474_v62 = vadd.f32 %v520_v60, %v473_v61 }
 0x34e   :  { %v622_v63 = vpop.f32.mrf.mxu1 }
 0x34f   :  { %480 = vst [vmem:[#allocation8] sm:$0xff] %v474_v62 }
 0x350   :  { %v476_v0 = vpop.f32.mrf.mxu1 }
 0x351   :  { %v477_v1 = vadd.f32 %v520_v60, %v476_v0 }
 0x352   :  { %v623_v2 = vpop.f32.mrf.mxu1 }
 0x353   :  { %481 = vst [vmem:[#allocation8 + $0x8] sm:$0xff] %v477_v1 }
 0x354   :  { %729 = shalt.err (!%p726_p5)
}
 0x355   :  { %s752_s14 = smov 128   ;;  %s753_s8 = smov 8  }
 0x356   :  { %493 = dma.vmem_to_hbm [thread:$0]  %s488_s13, 256, %s879_s9, [#allocation4], %s752_s14, %s752_s14, %s753_s8  }
 0x357   :  { %742 = dma.done.wait [#allocation4], 256  }
 0x358   :  { %743 = vsyncadd [#allocation4], 4294967040 }
 0x359   :  { %497 = vsyncpa [#allocation3], 1 }
 0x35a   :  { %498 = vsyncpa [#allocation6], 1 }
 0x35b   :  { %499 = vsyncpa [#allocation4], 1 }

</bundles_post_ra>
